<compile_context>
chip_gen: v7x
topology: tpu7x:2x2x1
jax: 0.10.0
libtpu: 0.0.40
codegen_flags: <defaults>
</compile_context>

<pallas_src>
import functools

import jax
import jax.numpy as jnp
from jax.experimental import pallas as pl
from jax.experimental.pallas import tpu as pltpu


_MIN_PALLAS_NDIM = 256
# TODO(synk): re-benchmark this cutoff now that the per-call P transpose is
# gone; for B <= 2 and N <= ~1024 a fused XLA gemv may still win on dispatch
# overhead alone.

_PT_TILE_BYTES_CAP = 4 * 1024 * 1024  # per-buffer cap for the streamed P.T tile


def _pick_tiles(n: int, itemsize: int) -> tuple[int, int]:
    """Return (tn, tk) for the transposed gemv; (0, 0) -> XLA fallback."""
    tk = 0
    for t in (512, 256, 128):
        if n % t == 0:
            tk = t
            break
    if tk == 0:
        return 0, 0
    # Output / lane tile: prefer N/2 so the "parallel" grid axis has 2 steps
    # (both v7x TensorCores stream half of P); fall back to full N, then to the
    # largest multiple-of-128 divisor under the per-buffer VMEM cap.
    cap_tn = max(128, (_PT_TILE_BYTES_CAP // (itemsize * tk)) // 128 * 128)
    candidates = []
    if n % 2 == 0 and (n // 2) % 128 == 0:
        candidates.append(n // 2)
    candidates.append(n)
    candidates.extend(range(cap_tn, 127, -128))
    for c in candidates:
        if 0 < c <= cap_tn and n % c == 0 and c % 128 == 0:
            return c, tk
    return 0, 0


def _projection_kernel(xt_ref, pt_ref, o_ref, *, tk: int):
    # xt_ref : (B, N)   resident x.T slab (compute dtype) -- index_map is
    #                   constant, so it is DMA'd once and reused every step.
    # pt_ref : (tk, tn) streamed P.T tile (compute dtype).
    # o_ref  : (B, tn)  f32 output tile, resident across the reduction (k) axis;
    #                   used directly as the accumulator (no scratch).
    k = pl.program_id(1)

    @pl.when(k == 0)
    def _init():
        o_ref[...] = jnp.zeros_like(o_ref)

    k_start = pl.multiple_of(k * tk, tk)
    o_ref[...] += jnp.dot(
        xt_ref[:, pl.ds(k_start, tk)],
        pt_ref[...],
        preferred_element_type=jnp.float32,
    )


def _projection_matmul(xt: jax.Array, pt: jax.Array, tn: int, tk: int) -> jax.Array:
    """(B, N) = xt @ pt, with xt (B, N) resident and pt (N, N) streamed."""
    b, n = xt.shape
    itemsize = jnp.dtype(pt.dtype).itemsize
    vmem_bytes = (
        2 * tk * tn * itemsize    # double-buffered streamed P.T tile
        + 2 * b * n * itemsize    # resident x.T slab (double-buffer allocation)
        + 2 * b * tn * 4          # f32 output tile
    )
    vmem_limit = int(min(48 * 1024 * 1024, max(16 * 1024 * 1024, 2 * vmem_bytes)))

    return pl.pallas_call(
        functools.partial(_projection_kernel, tk=tk),
        out_shape=jax.ShapeDtypeStruct((b, n), jnp.float32),
        grid=(n // tn, n // tk),  # (output cols [parallel], reduction [last])
        in_specs=[
            pl.BlockSpec((b, n), lambda j, k: (0, 0)),    # resident x.T slab
            pl.BlockSpec((tk, tn), lambda j, k: (k, j)),  # streamed P.T tile
            # TODO(synk): if profiling shows exposed DMA (per-tile compute is
            # tiny at B<=2), add pipeline_mode=pl.Buffered(3) to the P.T spec.
        ],
        out_specs=pl.BlockSpec((b, tn), lambda j, k: (0, j)),
        compiler_params=pltpu.CompilerParams(
            dimension_semantics=("parallel", "arbitrary"),
            vmem_limit_bytes=vmem_limit,
        ),
    )(xt, pt)


def projection_forward(pt_cached: jax.Array, x: jax.Array,
                       *, projection_matrix_f32: jax.Array | None = None) -> jax.Array:
    """torch.mm(P, x).squeeze(-1), given P.T pre-cast to the compute dtype."""
    n, n2 = pt_cached.shape
    n_x, b = x.shape
    assert n == n2, "projection matrix must be square"
    assert n_x == n, "x leading dim must equal ndim (torch.mm contract)"

    tn, tk = _pick_tiles(n, jnp.dtype(pt_cached.dtype).itemsize)
    if tn == 0 or n < _MIN_PALLAS_NDIM:
        # Tiny / oddly-sized problems: let XLA fuse it (Pallas overhead dominates).
        p = (projection_matrix_f32 if projection_matrix_f32 is not None
             else pt_cached.T.astype(jnp.float32))
        out = jnp.matmul(p, x)
        return out[:, 0] if b == 1 else out

    # Lane-dense transposed formulation: y.T = x.T @ P.T, shape (B, N).
    # The only per-call cast/transpose left is the tiny (B, N) x slab.
    xt = jnp.transpose(x).astype(pt_cached.dtype)
    out_t = _projection_matmul(xt, pt_cached, tn, tk).astype(x.dtype)  # (B, N)

    if b == 1:
        return out_t[0]          # torch .squeeze(-1) on the (N, 1) result
    return out_t.T               # back to torch.mm's (N, B) layout


class ProjectionTransform:
    """JAX/Pallas port of the PyTorch ProjectionTransform module.

    P is materialized once in f32 (matching torch.normal semantics modulo RNG
    stream) and cached pre-transposed in the compute dtype, so the per-call path
    never re-reads / re-casts the full N^2 matrix.
    """

    def __init__(self, ndim: int, key: jax.Array, compute_dtype=jnp.bfloat16):
        self.ndim = ndim
        mean = 0.0
        # NOTE: matches the PyTorch expression exactly; operator precedence makes
        # this 1/(2*ndim), NOT (1/ndim)**0.5.
        std = (1 / ndim) ** 1 / 2
        self.projection_matrix = (
            mean + std * jax.random.normal(key, (ndim, ndim), dtype=jnp.float32)
        )
        self.compute_dtype = compute_dtype
        # One-time pre-transpose + downcast (the dominant per-call cost before).
        self._pt = jnp.asarray(self.projection_matrix.T, dtype=compute_dtype)

    def __call__(self, x: jax.Array) -> jax.Array:
        return projection_forward(
            self._pt, x, projection_matrix_f32=self.projection_matrix
        )


if __name__ == "__main__":
    key = jax.random.PRNGKey(0)
    k1, k2, k3, k4, k5, k6 = jax.random.split(key, 6)

    # --- Case 1: module's canonical tiny size (N=32, B=1) -> XLA fallback path,
    #             exercises the squeeze(-1) behaviour.
    mod_s = ProjectionTransform(32, k1)
    x_s = jax.random.normal(k2, (32, 1), dtype=jnp.float32)
    y_s = jax.block_until_ready(mod_s(x_s))
    y_s_ref = jnp.matmul(mod_s.projection_matrix, x_s)[:, 0]
    assert y_s.shape == (32,), y_s.shape
    assert jnp.allclose(y_s, y_s_ref, atol=1e-5, rtol=1e-5)

    # --- Case 2: Pallas path, B=2.  N=768 -> tn=384 (2 parallel j-steps, one per
    #             v7x TC), tk=256 (3 reduction steps): 6 grid steps total.
    mod = ProjectionTransform(768, k3)
    x = jax.random.normal(k4, (768, 2), dtype=jnp.float32)
    y = jax.block_until_ready(mod(x))
    y_ref = jnp.matmul(mod.projection_matrix, x)
    assert y.shape == (768, 2), y.shape
    # P / x are streamed as bf16 (f32 accumulation) -> bf16-level tolerance.
    assert jnp.allclose(y, y_ref, atol=1e-3, rtol=5e-2)

    # --- Case 3: Pallas path with B=1 (squeezes to (N,)).  N=512 -> tn=256, tk=512.
    mod1 = ProjectionTransform(512, k5)
    x1 = jax.random.normal(k6, (512, 1), dtype=jnp.float32)
    y1 = jax.block_until_ready(mod1(x1))
    y1_ref = jnp.matmul(mod1.projection_matrix, x1)[:, 0]
    assert y1.shape == (512,), y1.shape
    assert jnp.allclose(y1, y1_ref, atol=1e-3, rtol=5e-2)

    print("KERNEL_OK")
</pallas_src>

<mosaic_0001>
module attributes {stable_mosaic.version = 11 : i64} {
  func.func @_projection_kernel(%arg0: i32, %arg1: i32, %arg2: memref<2x768xbf16, #tpu.memory_space<vmem>>, %arg3: memref<256x384xbf16, #tpu.memory_space<vmem>>, %arg4: memref<2x384xf32, #tpu.memory_space<vmem>>) attributes {dimension_semantics = [#tpu.dimension_semantics<parallel>, #tpu.dimension_semantics<arbitrary>], iteration_bounds = array<i64: 2, 3>, scalar_prefetch = 0 : i64, scratch_operands = 0 : i64, tpu.core_type = #tpu.core_type<tc>, window_params = [{pipeline_mode = #tpu.pipeline_mode<synchronous>, transform_indices = @transform_0, window_bounds = array<i64: 2, 768>}, {transform_indices = @transform_1, window_bounds = array<i64: 256, 384>}, {transform_indices = @transform_2, window_bounds = array<i64: 2, 384>}]} {
    %c0_i32 = arith.constant 0 : i32
    %0 = arith.cmpi eq, %arg1, %c0_i32 : i32
    %1 = arith.extui %0 : i1 to i32
    %c0_i32_0 = arith.constant 0 : i32
    %2 = arith.cmpi ne, %1, %c0_i32_0 : i32
    scf.if %2 {
      %cst_7 = arith.constant 0.000000e+00 : f32
      %12 = vector.broadcast %cst_7 : f32 to vector<2x384xf32>
      %c0_8 = arith.constant 0 : index
      %c0_9 = arith.constant 0 : index
      %13 = vector.load %arg4[%c0_8, %c0_9] : memref<2x384xf32, #tpu.memory_space<vmem>>, vector<2x384xf32>
      tpu.vector_store %arg4[%c0_8, %c0_9], %12 {strides = array<i32>} : memref<2x384xf32, #tpu.memory_space<vmem>>, vector<2x384xf32>,
    } else {
    }
    %c256_i32 = arith.constant 256 : i32
    %3 = arith.muli %arg1, %c256_i32 : i32
    %4 = tpu.assume_multiple %3, 256 : i32
    %c0 = arith.constant 0 : index
    %c0_1 = arith.constant 0 : index
    %5 = vector.load %arg4[%c0, %c0_1] : memref<2x384xf32, #tpu.memory_space<vmem>>, vector<2x384xf32>
    %c0_2 = arith.constant 0 : index
    %6 = arith.index_cast %4 : i32 to index
    %7 = vector.load %arg2[%c0_2, %6] : memref<2x768xbf16, #tpu.memory_space<vmem>>, vector<2x256xbf16>
    %c0_3 = arith.constant 0 : index
    %c0_4 = arith.constant 0 : index
    %8 = vector.load %arg3[%c0_3, %c0_4] : memref<256x384xbf16, #tpu.memory_space<vmem>>, vector<256x384xbf16>
    %cst = arith.constant dense<0.000000e+00> : vector<2x384xf32>
    %9 = tpu.matmul %7, %8, %cst {dimension_numbers = #tpu.dot_dimension_numbers<[1], [0], [0], [1], [0, 0, 1, 1], [], []>} : vector<2x256xbf16>, vector<256x384xbf16>, vector<2x384xf32> -> vector<2x384xf32>
    %10 = arith.addf %5, %9 : vector<2x384xf32>
    %c0_5 = arith.constant 0 : index
    %c0_6 = arith.constant 0 : index
    %11 = vector.load %arg4[%c0_5, %c0_6] : memref<2x384xf32, #tpu.memory_space<vmem>>, vector<2x384xf32>
    tpu.vector_store %arg4[%c0_5, %c0_6], %10 {strides = array<i32>} : memref<2x384xf32, #tpu.memory_space<vmem>>, vector<2x384xf32>,
    return
  }
  func.func @transform_0(%arg0: i32, %arg1: i32) -> (i32, i32) {
    %c0_i32 = arith.constant 0 : i32
    %c0_i32_0 = arith.constant 0 : i32
    %c0_i32_1 = arith.constant 0 : i32
    return %c0_i32, %c0_i32_0 : i32, i32
  }
  func.func @transform_1(%arg0: i32, %arg1: i32) -> (i32, i32) {
    %c0_i32 = arith.constant 0 : i32
    return %arg1, %arg0 : i32, i32
  }
  func.func @transform_2(%arg0: i32, %arg1: i32) -> (i32, i32) {
    %c0_i32 = arith.constant 0 : i32
    %c0_i32_0 = arith.constant 0 : i32
    return %c0_i32, %arg0 : i32, i32
  }
}

</mosaic_0001>

<bundles_post_ra>
// kernel: tpu_custom_call.1
= control target key start
LH: loop header
LB: loop body
LE: loop exit
PB: predicated region body
PF: predicated region fallthrough
CT: control target
= control target key end

     0   :  { %7 = vsyncpa [#allocation3], 0  ;;  %s1574_s0 = inlined_call_operand.hbm [shape: bf16[2,768], index: 0, kind: input, shape index: {}]   ;;  %s1575_s1 = inlined_call_operand.hbm [shape: bf16[768,768], index: 1, kind: input, shape index: {}]   ;;  %s1576_s2 = inlined_call_operand.hbm [shape: f32[2,768], index: 2, kind: output, shape index: {}]  }
   0x1   :  { %8 = vsyncpa [#allocation6], 0 }
   0x2   :  { %10 = vsyncpa [#allocation6 + $0x1], 0 }
   0x3   :  { %11 = vsyncpa [#allocation4], 0 }
   0x4   :  { %13 = vsyncpa [#allocation4 + $0x1], 0  ;;  %s1251_s9 = smov 0   ;;  %s1253_s10 = smov 0  }
   0x5   :  { %s1255_s11 = smov 0   ;;  %s1257_s12 = smov 0  }
   0x6   :  { %s1259_s13 = smov 0   ;;  %s1261_s14 = smov 0  }
   0x7   :  { %s1263_s15 = smov 0   ;;  %s1265_s16 = smov 0  }
   0x8   :  { %s1267_s17 = smov 0   ;;  %s1269_s18 = smov 0  }
   0x9   :  { %s1271_s19 = smov 0  }
   0xa LB: > { %1588 = sst [smem:[#allocation11_spill]] %s1193_s11  ;;  %s767_s20 = sadd.s32 4294967295, %s1225_s19   ;;  %s1225_s19 = sphi %s1271_s19, %s19_s19   ;;  %s1221_s18 = sphi %s1269_s18, %s1614_s18   ;;  %s1217_s17 = sphi %s1267_s17, %s1621_s17   ;;  %s1213_s16 = sphi %s1265_s16, %s1612_s16   ;;  %s1209_s15 = sphi %s1263_s15, %s1620_s15   ;;  %s1205_s14 = sphi %s1261_s14, %s1619_s14   ;;  %s1201_s13 = sphi %s1259_s13, %s1618_s13   ;;  %s1197_s12 = sphi %s1257_s12, %s1617_s12   ;;  %s1193_s11 = sphi %s1255_s11, %s1610_s11   ;;  %s1189_s10 = sphi %s1253_s10, %s1616_s10   ;;  %s1185_s9 = sphi %s1251_s9, %s1615_s9  }
   0xb   : > { %1589 = sst [smem:[#allocation12_spill]] %s1221_s18  ;;  %s768_s21 = sadd.s32 4294967294, %s1225_s19  }
   0xc   : > { %s28_s22 = sadd.s32 1, %s1217_s17  ;;  %s31_s23 = sadd.s32 1, %s1221_s18 }
   0xd   : > { %p29_p0 = scmp.ge.s32.totalorder %s28_s22, 3  ;;  %s61_s24 = sadd.s32 1, %s1205_s14 }
   0xe   : > { %p68_p1 = scmp.ne.s32.totalorder %s1205_s14, %s1201_s13  ;;  %p69_p2 = scmp.eq.s32.totalorder %s1225_s19, 0 }
   0xf   : > { %s1623_s22 = smov (%p29_p0, %s28_s22), 0  ;;  %s1625_s23 = smov (!%p29_p0, %s31_s23), %s1221_s18 }
  0x10   : > { %1590 = sst [smem:[#allocation13_spill]] %s1623_s22  ;;  %s56_s25 = ssub.s32 %s1217_s17, %s1623_s22 }
  0x11   : > { %p1317_p3 = por %p69_p2, %p68_p1  ;;  %p33_p4 = scmp.ge.s32.totalorder %s1625_s23, 2 }
  0x12   : > { %p74_p5 = scmp.ne.s32.totalorder %s1201_s13, %s1197_s12  ;;  %p1322_p6 = scmp.eq.s32.totalorder %s767_s20, 0 }
  0x13   : > { %s87_s28 = sadd.s32 1, %s1193_s11  ;;  %s1627_s23 = smov (%p33_p4, %s1625_s23), 0 }
  0x14   : > { %s1592_s27 = scalar_select %p1322_p6, 1, 0 }
  0x15   : > { %1593 = sst [smem:[#allocation14_spill]] %s1627_s23  ;;  %p1331_p7 = por %p1322_p6, %p74_p5 }
  0x16   : > { %p97_p8 = scmp.ne.s32.totalorder %s1193_s11, %s1189_s10  ;;  %s57_s30 = ssub.s32 %s1221_s18, %s1627_s23 }
  0x17   : > { %s1594_s29 = scalar_select %p1331_p7, 1, 0 }
  0x18   : > { %p98_p9 = scmp.eq.s32.totalorder %s767_s20, 5  ;;  %s58_s3 = sor.u32 %s57_s30, %s56_s25 }
  0x19   : > { %p85_p10 = scmp.eq.s32.totalorder %s57_s30, 0  ;;  %p59_p11 = scmp.eq.s32.totalorder %s58_s3, 0 }
  0x1a   : > { %p1339_p12 = por %p98_p9, %p97_p8  ;;  %p103_p13 = scmp.ne.s32.totalorder %s1189_s10, %s1185_s9 }
  0x1b   : > { %s1344_s5 = scalar_select %p85_p10, %s1193_s11, %s87_s28  }
  0x1c   : > { %s1595_s4 = scalar_select %p1339_p12, 1, 0 }
  0x1d   : > { %1596 = sst [smem:[#allocation15_spill]] %s1344_s5  ;;  %p104_p0 = scmp.eq.s32.totalorder %s768_s21, 5 }
  0x1e   : > { %s1347_s6 = scalar_select %p59_p11, %s1205_s14, %s61_s24  }
  0x1f   : > { %p769_p1 = scmp.ge.s32.totalorder %s1225_s19, 1  ;;  %p111_p2 = scmp.lt.s32.totalorder %s1225_s19, 7 }
  0x20   : > { %1597 = sst [smem:[#allocation16_spill]] %s1347_s6  ;;  %p1353_p4 = por %p104_p0, %p103_p13 }
  0x21   : > { %p1357_p5 = pnand %p769_p1, %p111_p2  ;;  %s1227_s12 = smov [#allocation2]  }
  0x22   : > { %s1598_s7 = scalar_select %p1353_p4, 1, 0 }
  0x23   : > { %s1599_s8 = scalar_select %p1357_p5, 1, 0 }
  0x24   : > { %s124_s20 = sshll.u32 %s1227_s12, 4  ;;  %p866_p8 = pneg %p1357_p5  ;;  %s125_s20 = int_to_ptr.vmem [resolvable:$true] %s124_s20 }
  0x25   : > { %p879_p9 = scmp.lt.s32.totalorder %s1225_s19, 6  ;;  %s1579_s24 = sand.u32 1, %s1205_s14  }
  0x26   : > { %p1367_p10 = pnand %p866_p8, %p1322_p6  ;;  %s854_s28 = smul.u32 384, %s1579_s24 }
  0x27   : > { %p1373_p11 = pnand %p879_p9, %p1317_p3  ;;  %s141_s30 = smul.u32 3, %s1221_s18 }
  0x28   : > { %s1041_s23 = scalar_lea.hbm %s1574_s0, 96  ;;  %p1043_p0 = pneg %p1367_p10 }
  0x29   : > { %s1601_s25 = scalar_select %p1373_p11, 1, 0 }
  0x2a   : > { %p1042_p13 = scmp.ne.s32.totalorder %s1574_s0, %s1041_s23  ;;  %p1048_p3 = scmp.lt.u32.totalorder %s1041_s23, %s1574_s0 }
  0x2c   : > { %p1044_p1 = pnand %p1043_p0, %p1042_p13 }
  0x2e   : > { %p1045_p2 = pneg %p1044_p1 }
  0x30   : > { %p1050_p8 = pnand %p1048_p3, %p1045_p2 }
  0x32   : > { %1053 = shalt.err (!%p1050_p8)
}
  0x33   : > { %s1054_s24 = scalar_lea.vmem %s125_s20, 96  ;;  %p1062_p7 = scmp.lt.s32.totalorder %s125_s20, %s125_s20 }
  0x34   : > { %p1055_p9 = scmp.ne.s32.totalorder %s125_s20, %s1054_s24  ;;  %p1063_p6 = scmp.lt.s32.totalorder %s1054_s24, %s1054_s24 }
  0x36   : > { %p1057_p4 = pnand %p1055_p9, %p1043_p0  ;;  %p1064_p5 = por %p1063_p6, %p1062_p7 }
  0x38   : > { %p1058_p12 = pneg %p1057_p4 }
  0x3a   : > { %p1065_p11 = pnand %p1064_p5, %p1058_p12 }
  0x3c   : > { %1068 = shalt.err (!%p1065_p11)
}
  0x3d   : > { %869 = dma.hbm_to_vmem [thread:$0]  (!%p1367_p10), %s1574_s0, 96, %s125_s20, [#allocation3]  }
  0x3e   : > { %s855_s23 = smul.u32 192, %s1217_s17  ;;  %s139_s5 = scalar_lea.vmem [#allocation5], %s854_s28 }
  0x3f   : > { %s149_s3 = sshll.u32 %s139_s5, 4  ;;  %s1602_s21 = sand.u32 1, %s1205_s14   ;;  %s1397_s3 = int_to_ptr.vmem [resolvable:$true] %s149_s3 }
  0x40   : > { %s146_s12 = sadd.s32 %s855_s23, %s141_s30  ;;  %s1406_s22 = scalar_lea.sflag [#allocation6], %s1602_s21 }
  0x41   : > { %s774_s24 = sshll.u32 %s146_s12, 6  ;;  %p1603_p7 = scmp.ne.s32.totalorder %s1601_s25, 0 }
  0x42   : > { %s1402_s11 = scalar_lea.hbm %s1575_s1, %s774_s24  ;;  %s1074_s18 = scalar_lea.hbm %s1575_s1, 36864 }
  0x43   : > { %s1069_s20 = scalar_lea.hbm %s1402_s11, 6144  ;;  %p1071_p12 = pneg %p1603_p7 }
  0x44   : > { %p1070_p6 = scmp.ne.s32.totalorder %s1402_s11, %s1069_s20  ;;  %p1075_p10 = scmp.lt.u32.totalorder %s1402_s11, %s1575_s1 }
  0x45   : > { %p1076_p11 = scmp.lt.u32.totalorder %s1074_s18, %s1069_s20  ;;  %p1078_p0 = scmp.lt.u32.totalorder %s1069_s20, %s1402_s11 }
  0x46   : > { %p1072_p4 = pnand %p1071_p12, %p1070_p6 }
  0x47   : > { %p1077_p13 = por %p1076_p11, %p1075_p10 }
  0x48   : > { %p1073_p5 = pneg %p1072_p4 }
  0x49   : > { %p1079_p1 = por %p1078_p0, %p1077_p13 }
  0x4b   : > { %p1080_p2 = pnand %p1079_p1, %p1073_p5 }
  0x4d   : > { %1083 = shalt.err (!%p1080_p2)
}
  0x4e   : > { %s1084_s5 = scalar_lea.vmem %s1397_s3, 6144  ;;  %s1228_s12 = smov [#allocation5]  }
  0x4f   : > { %p1085_p3 = scmp.ne.s32.totalorder %s1397_s3, %s1084_s5  ;;  %s1089_s24 = sshll.u32 %s1228_s12, 4  ;;  %s1090_s24 = int_to_ptr.vmem [resolvable:$false] %s1089_s24 }
  0x50   : > { %s1091_s26 = scalar_lea.vmem %s1090_s24, 12288  ;;  %p1092_p6 = scmp.lt.s32.totalorder %s1397_s3, %s1090_s24 }
  0x51   : > { %p1087_p8 = pnand %p1085_p3, %p1071_p12  ;;  %p1093_p4 = scmp.lt.s32.totalorder %s1091_s26, %s1084_s5 }
  0x53   : > { %p1088_p9 = pneg %p1087_p8  ;;  %p1094_p10 = por %p1093_p4, %p1092_p6 }
  0x55   : > { %p1095_p11 = pnand %p1094_p10, %p1088_p9 }
  0x57   : > { %1098 = shalt.err (!%p1095_p11)
}
  0x58   : > { %s1229_s21 = smov 384   ;;  %s1230_s20 = smov 192  }
  0x59   : > { %s1231_s28 = smov 12   ;;  %p1604_p12 = scmp.ne.s32.totalorder %s1599_s8, 0 }
  0x5a   : > { %873 = dma.hbm_to_vmem [thread:$0]  (!%p1603_p7), %s1402_s11, 6144, %s1397_s3, %s1406_s22, %s1229_s21, %s1230_s20, %s1231_s28  }
  0x5b   : > { %161 = sbr.rel (%p1604_p12) target bundleno = 413 (0x19d), region = 28  ;;  %p1605_p5 = scmp.ne.s32.totalorder (!%p1604_p12), %s1592_s27, 0 }
  0x62   : > { %1172 = dma.done.wait (%p1605_p5), [#allocation3], 96  }
  0x63   : > { %1174 = vsyncadd (%p1605_p5), [#allocation3], 4294967200  ;;  %s167_s30 = sand.u32 1, %s1201_s13   ;;  %p1606_p13 = scmp.ne.s32.totalorder %s1594_s29, 0 }
  0x64   : > { %s856_s18 = smul.u32 384, %s167_s30  ;;  %s168_s6 = scalar_lea.sflag [#allocation6], %s167_s30 }
  0x66   : > { %s1441_s23 = scalar_lea.vmem [#allocation5], %s856_s18 }
  0x67   : > { %1176 = dma.done.wait (%p1606_p13), %s168_s6, 6144  }
  0x68   : > { %1178 = vsyncadd (%p1606_p13), %s168_s6, 4294961152  ;;  %s189_s11 = sand.u32 1, %s1189_s10   ;;  %p777_p7 = scmp.ne.s32.totalorder %s1209_s15, 0 }
  0x69   : > { %s857_s8 = smul.u32 6, %s189_s11  ;;  %v1232_v0 = vmov (!%p777_p7), 0.0  }
  0x6a   : > { %199 = sbr.rel (%p777_p7) target bundleno = 113 (0x71), region = 40 }
  0x6b   : > { %s1450_s25 = scalar_lea.vmem [#allocation7], %s857_s8 }
  0x6c   : > { %200 = vst [vmem:[%s1450_s25] sm:$0x3f] (!%p777_p7), %v1232_v0 }
  0x71 PF: > { %v977_v1 = vld [vmem:[%s1441_s23 + $0x4] ss:$12 sps:$4 sm:$0xff]   ;;  %v979_v2 = vld [vmem:[%s1441_s23] ss:$12 sps:$4 sm:$0xff]   ;;  %v980_v3 = vld [vmem:[%s1441_s23 + $0x1c] ss:$12 sps:$4 sm:$0xff]   ;;  %v283_v31 = vlaneseq }
  0x72   : > { %552 = vmatprep.subr.bf16.mxu0 %v977_v1  ;;  %v982_v4 = vld [vmem:[%s1441_s23 + $0x18] ss:$12 sps:$4 sm:$0xff]   ;;  %v983_v5 = vld [vmem:[%s1441_s23 + $0x34] ss:$12 sps:$4 sm:$0xff]   ;;  %v985_v6 = vld [vmem:[%s1441_s23 + $0x30] ss:$12 sps:$4 sm:$0xff]  }
  0x73   : > { %553 = vmatpush1.bf16.msra.mxu0 %v979_v2  ;;  %v986_v7 = vld [vmem:[%s1441_s23 + $0x4c] ss:$12 sps:$4 sm:$0xff]   ;;  %v988_v8 = vld [vmem:[%s1441_s23 + $0x48] ss:$12 sps:$4 sm:$0xff]   ;;  %v989_v9 = vld [vmem:[%s1441_s23 + $0x64] ss:$12 sps:$4 sm:$0xff]  }
  0x74   : > { %554 = vmatprep.subr.bf16.mxu0 %v980_v3  ;;  %v1001_v10 = vld [vmem:[%s1441_s23 + $0xc8] ss:$12 sps:$4 sm:$0xff]   ;;  %v991_v12 = vld [vmem:[%s1441_s23 + $0x60] ss:$12 sps:$4 sm:$0xff]   ;;  %v994_v16 = vld [vmem:[%s1441_s23 + $0x78] ss:$12 sps:$4 sm:$0xff]  }
  0x75   : > { %v1002_v11 = vld [vmem:[%s1441_s23 + $0x8] ss:$12 sps:$4 sm:$0xff]   ;;  %832 = vmatprep.subr.bf16.mxu1 %v1001_v10  ;;  %v1006_v13 = vld [vmem:[%s1441_s23 + $0xe0] ss:$12 sps:$4 sm:$0xff]   ;;  %v1011_v17 = vld [vmem:[%s1441_s23 + $0xf8] ss:$12 sps:$4 sm:$0xff]  }
  0x76   : > { %833 = vmatpush3.bf16.msra.mxu1 %v1002_v11  ;;  %v1007_v14 = vld [vmem:[%s1441_s23 + $0x20] ss:$12 sps:$4 sm:$0xff]   ;;  %v992_v15 = vld [vmem:[%s1441_s23 + $0x7c] ss:$12 sps:$4 sm:$0xff]   ;;  %v1012_v18 = vld [vmem:[%s1441_s23 + $0x38] ss:$12 sps:$4 sm:$0xff]  }
  0x77   : > { %555 = vmatpush1.bf16.msra.mxu0 %v982_v4  ;;  %834 = vmatprep.subr.bf16.mxu1 %v1006_v13  ;;  %v995_v19 = vld [vmem:[%s1441_s23 + $0x94] ss:$12 sps:$4 sm:$0xff]   ;;  %v1016_v20 = vld [vmem:[%s1441_s23 + $0x110] ss:$12 sps:$4 sm:$0xff]   ;;  %v998_v23 = vld [vmem:[%s1441_s23 + $0xac] ss:$12 sps:$4 sm:$0xff]  }
  0x78   : > { %556 = vmatprep.subr.bf16.mxu0 %v983_v5  ;;  %v1017_v21 = vld [vmem:[%s1441_s23 + $0x50] ss:$12 sps:$4 sm:$0xff]   ;;  %v1021_v24 = vld [vmem:[%s1441_s23 + $0x128] ss:$12 sps:$4 sm:$0xff]   ;;  %s778_s27 = sshll.u32 %s1209_s15, 8  ;;  %v284_v37 = vshrl.u32 %v283_v31, 7 }
  0x79   : > { %v997_v22 = vld [vmem:[%s1441_s23 + $0x90] ss:$12 sps:$4 sm:$0xff]   ;;  %v1000_v25 = vld [vmem:[%s1441_s23 + $0xa8] ss:$12 sps:$4 sm:$0xff]   ;;  %v1026_v28 = vld [vmem:[%s1441_s23 + $0x140] ss:$12 sps:$4 sm:$0xff]  }
  0x7a   : > { %835 = vmatpush3.bf16.msra.mxu1 %v1007_v14  ;;  %v1022_v26 = vld [vmem:[%s1441_s23 + $0x68] ss:$12 sps:$4 sm:$0xff]   ;;  %v1003_v27 = vld [vmem:[%s1441_s23 + $0xc4] ss:$12 sps:$4 sm:$0xff]   ;;  %v1233_v29 = vmov 1966171168  }
  0x7b   : > { %557 = vmatpush1.bf16.msra.mxu0 %v985_v6  ;;  %836 = vmatprep.subr.bf16.mxu1 %v1011_v17  ;;  %v281_v30 = vunpack.c.l.s4 %v1233_v29  ;;  %s203_s29 = sshra.s32 %s778_s27, 7  ;;  %v1005_v32 = vld [vmem:[%s1441_s23 + $0xc0] ss:$12 sps:$4 sm:$0xff]   ;;  %v1031_v34 = vld [vmem:[%s1441_s23 + $0x158] ss:$12 sps:$4 sm:$0xff]   ;;  %s831_s3 = smul.u32 96, %s1213_s16 }
  0x7c   : > { %558 = vmatprep.subr.bf16.mxu0 %v986_v7  ;;  %v1027_v33 = vld [vmem:[%s1441_s23 + $0x80] ss:$12 sps:$4 sm:$0xff]   ;;  %v1008_v35 = vld [vmem:[%s1441_s23 + $0xdc] ss:$12 sps:$4 sm:$0xff]   ;;  %v1010_v38 = vld [vmem:[%s1441_s23 + $0xd8] ss:$12 sps:$4 sm:$0xff]  }
  0x7d   : > { %v282_v36 = vunpack.c.0.s8 %v281_v30  ;;  %v1032_v39 = vld [vmem:[%s1441_s23 + $0x98] ss:$12 sps:$4 sm:$0xff]   ;;  %v1036_v40 = vld [vmem:[%s1441_s23 + $0x170] ss:$12 sps:$4 sm:$0xff]   ;;  %v1013_v41 = vld [vmem:[%s1441_s23 + $0xf4] ss:$12 sps:$4 sm:$0xff]   ;;  %s1509_s24 = scalar_lea.hbm %s1576_s2, %s831_s3 }
  0x7e   : > { %837 = vmatpush3.bf16.msra.mxu1 %v1012_v18  ;;  %s205_s15 = scalar_lea.vmem [#allocation2], %s203_s29  ;;  %v1037_v44 = vld [vmem:[%s1441_s23 + $0xb0] ss:$12 sps:$4 sm:$0xff]   ;;  %v1018_v47 = vld [vmem:[%s1441_s23 + $0x10c] ss:$12 sps:$4 sm:$0xff]   ;;  %s670_s22 = sshll.u32 %s1450_s25, 4  ;;  %s1511_s22 = int_to_ptr.vmem [resolvable:$true] %s670_s22 }
  0x7f   : > { %559 = vmatpush1.bf16.msra.mxu0 %v988_v8  ;;  %838 = vmatprep.subr.bf16.mxu1 %v1016_v20  ;;  %v285_v42 = vsub.s32 %v282_v36, %v284_v37  ;;  %v779_v43 = vld.sshfl [vmem:[%s205_s15] sm:$0x11 pattern:$0x75316420]  ;;  %v1015_v46 = vld [vmem:[%s1441_s23 + $0xf0] ss:$12 sps:$4 sm:$0xff]  }
  0x80   : > { %560 = vmatprep.subr.bf16.mxu0 %v989_v9  ;;  %v279_v45 = vcombine.high %v779_v43, %v779_v43  ;;  %v1020_v50 = vld [vmem:[%s1441_s23 + $0x108] ss:$12 sps:$4 sm:$0xff]   ;;  %v1023_v51 = vld [vmem:[%s1441_s23 + $0x124] ss:$12 sps:$4 sm:$0xff]   ;;  %v1025_v52 = vld [vmem:[%s1441_s23 + $0x120] ss:$12 sps:$4 sm:$0xff]  }
  0x81   : > { %v286_v49 = vrot.slane %v779_v43, %v285_v42  ;;  %v1028_v53 = vld [vmem:[%s1441_s23 + $0x13c] ss:$12 sps:$4 sm:$0xff]   ;;  %v1030_v54 = vld [vmem:[%s1441_s23 + $0x138] ss:$12 sps:$4 sm:$0xff]   ;;  %v1033_v55 = vld [vmem:[%s1441_s23 + $0x154] ss:$12 sps:$4 sm:$0xff]  }
  0x82   : > { %839 = vmatpush3.bf16.msra.mxu1 %v1017_v21  ;;  %v293_v48 = vrot.slane %v279_v45, %v285_v42  ;;  %v1035_v56 = vld [vmem:[%s1441_s23 + $0x150] ss:$12 sps:$4 sm:$0xff]   ;;  %v1038_v57 = vld [vmem:[%s1441_s23 + $0x16c] ss:$12 sps:$4 sm:$0xff]   ;;  %v1040_v58 = vld [vmem:[%s1441_s23 + $0x168] ss:$12 sps:$4 sm:$0xff]  }
  0x83   : > { %561 = vmatpush1.bf16.msra.mxu0 %v991_v12  ;;  %840 = vmatprep.subr.bf16.mxu1 %v1021_v24  ;;  %v1234_v0 = vmov 1983009808   ;;  %v202_v11 = vld [vmem:[%s1450_s25] sm:$0x3f]  ;;  %s656_s26 = scalar_lea.sflag [#allocation4], %s189_s11  ;;  %s1099_s21 = scalar_lea.vmem %s1511_s22, 96 }
  0x84   : > { %562 = vmatprep.subr.bf16.mxu0 %v992_v15  ;;  %625 = vmatprep.mubr.bf16.mxu1 %v293_v48  ;;  %v638_v1 = vunpack.c.l.s4 %v1234_v0  ;;  %p1100_p0 = scmp.ne.s32.totalorder %s1511_s22, %s1099_s21  ;;  %p1607_p1 = scmp.ne.s32.totalorder %s1595_s4, 0 }
  0x85   : > { %584 = vmatprep.mubr.bf16.mxu0 %v293_v48  ;;  %s1235_s16 = smov [#allocation7]  }
  0x86   : > { %841 = vmatpush3.bf16.msra.mxu1 %v1022_v26  ;;  %v639_v2 = vunpack.c.0.s8 %v638_v1  ;;  %p1101_p2 = pnand %p1100_p0, %p1607_p1  ;;  %s1103_s20 = sshll.u32 %s1235_s16, 4  ;;  %s1104_s20 = int_to_ptr.vmem [resolvable:$false] %s1103_s20 }
  0x87   : > { %563 = vmatpush1.bf16.msra.mxu0 %v994_v16  ;;  %842 = vmatprep.subr.bf16.mxu1 %v1026_v28  ;;  %s1105_s28 = scalar_lea.vmem %s1104_s20, 192  ;;  %p1106_p8 = scmp.lt.s32.totalorder %s1511_s22, %s1104_s20 }
  0x88   : > { %564 = vmatprep.subr.bf16.mxu0 %v995_v19  ;;  %v642_v3 = vsub.s32 %v639_v2, %v284_v37  ;;  %p1102_p3 = pneg %p1101_p2  ;;  %p1107_p9 = scmp.lt.s32.totalorder %s1105_s28, %s1099_s21 }
  0x8a   : > { %843 = vmatpush3.bf16.msra.mxu1 %v1027_v33  ;;  %p1108_p6 = por %p1107_p9, %p1106_p8 }
  0x8b   : > { %565 = vmatpush1.bf16.msra.mxu0 %v997_v22  ;;  %844 = vmatprep.subr.bf16.mxu1 %v1031_v34 }
  0x8c   : > { %566 = vmatprep.subr.bf16.mxu0 %v998_v23  ;;  %p1109_p4 = pnand %p1108_p6, %p1102_p3 }
  0x8e   : > { %845 = vmatpush3.bf16.msra.mxu1 %v1032_v39 }
  0x8f   : > { %567 = vmatpush1.bf16.msra.mxu0 %v1000_v25  ;;  %846 = vmatprep.subr.bf16.mxu1 %v1036_v40 }
  0x90   : > { %568 = vmatprep.subr.bf16.mxu0 %v1003_v27 }
  0x92   : > { %847 = vmatpush3.bf16.msra.mxu1 %v1037_v44 }
  0x93   : > { %569 = vmatpush1.bf16.msra.mxu0 %v1005_v32 }
  0x94   : > { %570 = vmatprep.subr.bf16.mxu0 %v1008_v35 }
  0x95   : > { %626 = vmatmul.mubr.bf16.vlgmr.msra.gmra.mrb[0].mxu1 %v286_v49 }
  0x97   : > { %571 = vmatpush1.bf16.msra.mxu0 %v1010_v38 }
  0x98   : > { %572 = vmatprep.subr.bf16.mxu0 %v1013_v41 }
  0x9b   : > { %573 = vmatpush1.bf16.msra.mxu0 %v1015_v46 }
  0x9c   : > { %574 = vmatprep.subr.bf16.mxu0 %v1018_v47 }
  0x9f   : > { %575 = vmatpush1.bf16.msra.mxu0 %v1020_v50 }
  0xa0   : > { %576 = vmatprep.subr.bf16.mxu0 %v1023_v51 }
  0xa3   : > { %577 = vmatpush1.bf16.msra.mxu0 %v1025_v52 }
  0xa4   : > { %578 = vmatprep.subr.bf16.mxu0 %v1028_v53 }
  0xa7   : > { %579 = vmatpush1.bf16.msra.mxu0 %v1030_v54 }
  0xa8   : > { %580 = vmatprep.subr.bf16.mxu0 %v1033_v55 }
  0xab   : > { %581 = vmatpush1.bf16.msra.mxu0 %v1035_v56 }
  0xac   : > { %582 = vmatprep.subr.bf16.mxu0 %v1038_v57 }
  0xaf   : > { %583 = vmatpush1.bf16.msra.mxu0 %v1040_v58 }
  0xb2   : > { %585 = vmatmul.mubr.bf16.vlgmr.msra.gmra.mrb[0].mxu0 %v286_v49 }
 0x168   : > { %v848_v59 = vpop.f32.mrb[0].mxu1 }
 0x169   : > { %v849_v60 = vpop.f32.mrb[1].mxu1 }
 0x16a   : > { %v850_v61 = vadd.f32 %v849_v60, %v848_v59  ;;  %v851_v62 = vpop.f32.mrb[2].mxu1 }
 0x16b   : > { %v852_v63 = vpop.f32.mrb[3].mxu1 }
 0x16c   : > { %v650_v6 = vrot.slane %v850_v61, %v642_v3 }
 0x185   : > { %v586_v4 = vpop.f32.mrb[0].mxu0 }
 0x186   : > { %v588_v5 = vpop.f32.mrb[1].mxu0 }
 0x187   : > { %v636_v7 = vcombine.low %v586_v4, %v588_v5  ;;  %v590_v8 = vpop.f32.mrb[2].mxu0 }
 0x188   : > { %v591_v9 = vpop.f32.mrb[3].mxu0 }
 0x189   : > { %v643_v10 = vrot.slane %v636_v7, %v642_v3 }
 0x18b   : > { %v651_v12 = vcombine.low %v643_v10, %v650_v6 }
 0x18d   : > { %v653_v13 = vadd.f32 %v651_v12, %v202_v11 }
 0x18f   : > { %654 = vst [vmem:[%s1450_s25] sm:$0x3f] %v653_v13 }
 0x190   : > { %1112 = shalt.err (!%p1109_p4)
}
 0x191   : > { %s1113_s30 = scalar_lea.hbm %s1509_s24, 96  ;;  %s1117_s23 = scalar_lea.hbm %s1576_s2, 192 }
 0x192   : > { %p1114_p10 = scmp.ne.s32.totalorder %s1509_s24, %s1113_s30  ;;  %p1118_p5 = scmp.lt.u32.totalorder %s1509_s24, %s1576_s2 }
 0x193   : > { %p1119_p13 = scmp.lt.u32.totalorder %s1117_s23, %s1113_s30  ;;  %p1121_p0 = scmp.lt.u32.totalorder %s1113_s30, %s1509_s24 }
 0x194   : > { %p1115_p11 = pnand %p1114_p10, %p1607_p1 }
 0x195   : > { %p1120_p7 = por %p1119_p13, %p1118_p5 }
 0x196   : > { %p1116_p12 = pneg %p1115_p11 }
 0x197   : > { %p1122_p2 = por %p1121_p0, %p1120_p7 }
 0x199   : > { %p1123_p3 = pnand %p1122_p2, %p1116_p12 }
 0x19b   : > { %1126 = shalt.err (!%p1123_p3)
}
 0x19c   : > { %864 = dma.vmem_to_hbm [thread:$0]  (%p1607_p1), %s1511_s22, 96, %s1509_s24, %s656_s26  }
 0x19d PF: > { %p881_p8 = scmp.ge.s32.totalorder %s1225_s19, 2  ;;  %s682_s25 = sand.u32 1, %s1185_s9  }
 0x19e   : > { %p1608_p9 = scmp.ne.s32.totalorder %s1598_s7, 0  ;;  %s683_s27 = scalar_lea.sflag [#allocation4], %s682_s25 }
 0x1a0   : > { %p875_p6 = pnand %p881_p8, %p1608_p9 }
 0x1a2   : > { %1180 = dma.done.wait (!%p875_p6), %s683_s27, 96  }
 0x1a3   : > { %1182 = vsyncadd (!%p875_p6), %s683_s27, 4294967200  ;;  %s19_s19 = sadd.s32 1, %s1225_s19   ;;  %s1609_s29 = sld [smem:[#allocation11_spill]] }
 0x1a4   : > { %p16_p4 = scmp.ge.s32.totalorder %s19_s19, 8   ;;  %s1610_s11 = sld [smem:[#allocation15_spill]] }
 0x1a5   : > { %s1611_s4 = sld [smem:[#allocation16_spill]]  ;;  %s1612_s16 = sld [smem:[#allocation12_spill]] }
 0x1a6   : > { %s1613_s3 = sld [smem:[#allocation13_spill]]  ;;  %s1614_s18 = sld [smem:[#allocation14_spill]] }
 0x1a7   : > { %s1615_s9 = smov %s1189_s10  ;;  %s1617_s12 = smov %s1201_s13 }
 0x1a8   : > { %s1618_s13 = smov %s1205_s14  ;;  %s1620_s15 = smov %s1217_s17 }
 0x1a9   : > { %s1616_s10 = smov %s1609_s29  ;;  %18 = sbr.rel (!%p16_p4) target bundleno = 10 (0xa), region = 83 }
 0x1ab   : > { %s1619_s14 = smov %s1611_s4 }
 0x1ac   : > { %s1621_s17 = smov %s1613_s3 }
 0x1b0   :  { %688 = vsyncpa [#allocation3], 1 }
 0x1b1   :  { %690 = vsyncpa [#allocation3 + $0x1], 1 }
 0x1b2   :  { %691 = vsyncpa [#allocation6], 1 }
 0x1b3   :  { %693 = vsyncpa [#allocation6 + $0x1], 1 }
 0x1b4   :  { %694 = vsyncpa [#allocation4], 1 }
 0x1b5   :  { %696 = vsyncpa [#allocation4 + $0x1], 1 }

</bundles_post_ra>
